<compile_context>
chip_gen: v7x
topology: tpu7x:2x2x1
jax: 0.10.0
libtpu: 0.0.40
codegen_flags: <defaults>
</compile_context>

<pallas_src>
import functools

import jax
import jax.numpy as jnp
from jax.experimental import pallas as pl
from jax.experimental.pallas import tpu as pltpu

IN, OUT = 16, 32        # torch.nn.Linear(16, 32)
B_PAD = 8               # f32 sublane width
OUT_PAD = 128           # lane width (lane-dense output)
K_PAD = 24              # IN rows of W^T + 1 bias row + padding (multiple of 8)
BIAS_ROW = IN           # row index of the folded bias inside the param slab


def linear_bias_relu_kernel(x_ref, p_ref, o_ref):
    # x_ref: (B_PAD, K_PAD)   -- activations, col BIAS_ROW == 1.0
    # p_ref: (K_PAD, OUT_PAD) -- rows 0..IN-1 = W^T, row BIAS_ROW = (b+1), rest 0
    # o_ref: (B_PAD, OUT_PAD)
    y = jnp.dot(x_ref[...], p_ref[...], preferred_element_type=jnp.float32)
    o_ref[...] = jnp.maximum(y, 0.0).astype(o_ref.dtype)


def prepare_params(w, b):
    """One-time parameter prep: transpose, fold +1 bias into the matmul, pad.

    w: (OUT, IN) torch-layout weight, b: (OUT,) bias.
    Returns params_pad (K_PAD, OUT_PAD) f32:
      rows 0..IN-1    = W^T        (cols OUT..127 zero)
      row  BIAS_ROW   = b + 1.0    (cols OUT..127 zero)
      rows IN+1..K_PAD-1 = 0
    Padded columns stay zero -> padded outputs are relu(0)=0 and sliced away.
    """
    p = jnp.zeros((K_PAD, OUT_PAD), jnp.float32)
    p = p.at[:IN, :OUT].set(w.T)
    p = p.at[BIAS_ROW, :OUT].set(b + 1.0)
    return p


@functools.partial(jax.jit, static_argnames=())
def forward(x, params_pad):
    B = x.shape[0]
    assert B <= B_PAD, f"batch {B} > {B_PAD}; add a grid over batch for larger B"
    # Pad batch to the sublane width, pad K to K_PAD, and set the constant
    # "1" column that multiplies the folded-in bias row of the param slab.
    x_pad = jnp.zeros((B_PAD, K_PAD), jnp.float32)
    x_pad = x_pad.at[:B, :IN].set(x)
    x_pad = x_pad.at[:, BIAS_ROW].set(1.0)   # garbage rows B..7 are sliced away

    y_pad = pl.pallas_call(
        linear_bias_relu_kernel,
        out_shape=jax.ShapeDtypeStruct((B_PAD, OUT_PAD), jnp.float32),
        in_specs=[
            pl.BlockSpec(memory_space=pltpu.MemorySpace.VMEM),
            pl.BlockSpec(memory_space=pltpu.MemorySpace.VMEM),
        ],
        out_specs=pl.BlockSpec(memory_space=pltpu.MemorySpace.VMEM),
        cost_estimate=pl.CostEstimate(
            flops=2 * B_PAD * K_PAD * OUT_PAD,
            transcendentals=0,
            bytes_accessed=4 * (B_PAD * K_PAD + K_PAD * OUT_PAD + B_PAD * OUT_PAD),
        ),
    )(x_pad, params_pad)

    # Slice out the valid (B, OUT) block (fused by XLA around the custom call).
    return y_pad[:B, :OUT]


if __name__ == "__main__":
    key = jax.random.PRNGKey(0)
    k_x, k_w, k_b = jax.random.split(key, 3)

    # Deterministic parameter init (mimicking torch.nn.Linear's uniform range).
    bound = 1.0 / (IN ** 0.5)
    w = jax.random.uniform(k_w, (OUT, IN), jnp.float32, -bound, bound)  # torch layout (OUT, IN)
    b = jax.random.uniform(k_b, (OUT,), jnp.float32, -bound, bound)

    x1 = jax.random.normal(k_x, (1, IN), jnp.float32)

    params_pad = prepare_params(w, b)   # one-time prep (bias + 1 folded into matmul)

    out = forward(x1, params_pad)
    jax.block_until_ready(out)

    # Reference check in plain JAX: relu(x @ W^T + b + 1)
    ref = jnp.maximum(x1 @ w.T + b + 1.0, 0.0)
    assert out.shape == (1, OUT)
    assert jnp.allclose(out, ref, atol=1e-5), "mismatch vs reference"

    print("KERNEL_OK")
</pallas_src>

<mosaic_0001>
module attributes {stable_mosaic.version = 11 : i64} {
  func.func @linear_bias_relu_kernel(%arg0: memref<8x24xf32, #tpu.memory_space<vmem>>, %arg1: memref<24x128xf32, #tpu.memory_space<vmem>>, %arg2: memref<8x128xf32, #tpu.memory_space<vmem>>) attributes {dimension_semantics = [], scalar_prefetch = 0 : i64, scratch_operands = 0 : i64, tpu.core_type = #tpu.core_type<tc>} {
    %c0 = arith.constant 0 : index
    %c0_0 = arith.constant 0 : index
    %0 = vector.load %arg0[%c0, %c0_0] : memref<8x24xf32, #tpu.memory_space<vmem>>, vector<8x24xf32>
    %c0_1 = arith.constant 0 : index
    %c0_2 = arith.constant 0 : index
    %1 = vector.load %arg1[%c0_1, %c0_2] : memref<24x128xf32, #tpu.memory_space<vmem>>, vector<24x128xf32>
    %cst = arith.constant dense<0.000000e+00> : vector<8x128xf32>
    %2 = tpu.matmul %0, %1, %cst {dimension_numbers = #tpu.dot_dimension_numbers<[1], [0], [0], [1], [0, 0, 1, 1], [], []>} : vector<8x24xf32>, vector<24x128xf32>, vector<8x128xf32> -> vector<8x128xf32>
    %cst_3 = arith.constant 0.000000e+00 : f32
    %3 = vector.broadcast %cst_3 : f32 to vector<8x128xf32>
    %4 = arith.maximumf %2, %3 : vector<8x128xf32>
    %c0_4 = arith.constant 0 : index
    %c0_5 = arith.constant 0 : index
    %5 = vector.load %arg2[%c0_4, %c0_5] : memref<8x128xf32, #tpu.memory_space<vmem>>, vector<8x128xf32>
    tpu.vector_store %arg2[%c0_4, %c0_5], %4 {strides = array<i32>} : memref<8x128xf32, #tpu.memory_space<vmem>>, vector<8x128xf32>,
    return
  }
}

</mosaic_0001>

<bundles_post_ra>
// kernel: forward.1
= control target key start
LH: loop header
LB: loop body
LE: loop exit
PB: predicated region body
PF: predicated region fallthrough
CT: control target
= control target key end

     0   :  { %v115_v0 = vmov 0.0|0.0   ;;  %vm116_vm0 = vmmov 0   ;;  %v117_v3 = vmov 0.0   ;;  %vm15_vm1 = vcmask 195584   ;;  %s148_s1 = inlined_call_operand.vmem [shape: f32[24,128], index: 1, kind: input, shape index: {}]   ;;  %s149_s0 = inlined_call_operand.vmem [shape: f32[8,24], index: 0, kind: input, shape index: {}]   ;;  %s150_s2 = inlined_call_operand.vmem [shape: f32[8,128], index: 2, kind: output, shape index: {}]  }
   0x1   :  { %109 = vmatprep.subr.bf16.mxu0 %v115_v0  ;;  %v12_v1 = vld [vmem:[%s148_s1] sm:$0xff]  ;;  %v13_v2 = vld [vmem:[%s148_s1 + $0x8] sm:$0xff]  ;;  %106 = vmatprep.mubr.msk.f32.mxu0 %vm116_vm0, %v117_v3  ;;  %v14_v5 = vld [vmem:[%s148_s1 + $0x10] sm:$0xff] }
   0x2   :  { %v110_v4 = vpack.c.bf16 %v13_v2, %v12_v1  ;;  %v11_v6 = vld [vmem:[%s149_s0] sm:$0xff] }
   0x4   :  { %111 = vmatpush3.bf16.msra.mxu0 %v110_v4 }
   0x5   :  { %104 = vmatprep.subr.mxu0 %v117_v3 }
   0x8   :  { %105 = vmatpush3.msra.mxu0 %v14_v5 }
   0x9   :  { %107 = vmatmul.mubr.msk.f32.vlgmr.msra.gmra.mrb[0].mxu0 %vm15_vm1, %v11_v6 }
  0xdc   :  { %v85_v7 = vpop.f32.mrb[0].mxu0 }
  0xdd   :  { %v89_v8 = vmax.f32 %v85_v7, 0.0  ;;  %v108_v9 = vpop.f32.mrb[1].mxu0 }
  0xdf   :  { %90 = vst [vmem:[%s150_s2] sm:$0xff] %v89_v8 }

</bundles_post_ra>
